<compile_context>
chip_gen: v7x
topology: tpu7x:2x2x1
jax: 0.10.0
libtpu: 0.0.40
codegen_flags: <defaults>
</compile_context>

<pallas_src>
import math

import jax
import jax.numpy as jnp
from jax.experimental import pallas as pl
from jax.experimental.pallas import tpu as pltpu


def _ffn_kernel(x_ref, w1_ref, b1_ref, w2_ref, b2_ref, o_ref):
    # x: (TILE_M, H), w1: (H, I), b1: (1, I), w2: (I, H), b2: (1, H)
    x = x_ref[...]
    h = jnp.dot(x, w1_ref[...], preferred_element_type=jnp.float32)
    h = h + b1_ref[...]                       # broadcast (1, I) over rows, f32
    # exact GELU: 0.5 * h * (1 + erf(h / sqrt(2)))  (f32 math, erf on EUP/VPU)
    g = 0.5 * h * (1.0 + jax.lax.erf(h * 0.7071067811865475))
    out = jnp.dot(g.astype(w2_ref.dtype), w2_ref[...],
                  preferred_element_type=jnp.float32)
    out = out + b2_ref[...]                   # broadcast (1, H) over rows, f32
    o_ref[...] = out.astype(o_ref.dtype)


def _round_up(x, m):
    return ((x + m - 1) // m) * m


def feed_forward(x, w1, b1, w2, b2, *, tile_m=512, compute_dtype=None):
    """x: (B, S, H). w1: (H, I), b1: (I,), w2: (I, H), b2: (H,).

    Returns (B, S, H) in x.dtype.

    compute_dtype: dtype fed to the MXU for x/w1/w2 (e.g. jnp.bfloat16 on
    v6e/v7x). Accumulation, bias add and GELU stay in float32.
    Default: x.dtype (exactly matches the PyTorch module in f32).
    """
    B, S, H = x.shape
    I = w1.shape[1]
    M = B * S

    if compute_dtype is None:
        compute_dtype = x.dtype

    # Row tile: either a single full-extent tile (always a legal block shape)
    # or a multiple of 8 sublanes; the last partial tile is masked by Pallas.
    if tile_m >= M:
        tile_m = M
    else:
        tile_m = _round_up(tile_m, 8)
    grid_m = pl.cdiv(M, tile_m)

    x2d = x.reshape(M, H).astype(compute_dtype)   # reshape is a free view
    w1c = w1.astype(compute_dtype)
    w2c = w2.astype(compute_dtype)
    b1f = b1.reshape(1, I).astype(jnp.float32)
    b2f = b2.reshape(1, H).astype(jnp.float32)

    out2d = pl.pallas_call(
        _ffn_kernel,
        out_shape=jax.ShapeDtypeStruct((M, H), x.dtype),
        grid_spec=pltpu.PrefetchScalarGridSpec(
            num_scalar_prefetch=0,
            grid=(grid_m,),
            in_specs=[
                # x tile marches down the rows; weights/biases stay resident.
                pl.BlockSpec((tile_m, H), lambda i: (i, 0)),
                pl.BlockSpec((H, I), lambda i: (0, 0)),
                pl.BlockSpec((1, I), lambda i: (0, 0)),
                pl.BlockSpec((I, H), lambda i: (0, 0)),
                pl.BlockSpec((1, H), lambda i: (0, 0)),
            ],
            out_specs=pl.BlockSpec((tile_m, H), lambda i: (i, 0)),
        ),
        compiler_params=pltpu.CompilerParams(
            dimension_semantics=("parallel",),
            vmem_limit_bytes=64 * 1024 * 1024,
        ),
    )(x2d, w1c, b1f, w2c, b2f)

    return out2d.reshape(B, S, H)


def _init_linear(key, fan_in, fan_out):
    """Deterministic init mimicking nn.Linear: U(-1/sqrt(fan_in), 1/sqrt(fan_in))."""
    kw, kb = jax.random.split(key)
    bound = 1.0 / math.sqrt(fan_in)
    w = jax.random.uniform(kw, (fan_in, fan_out), jnp.float32, -bound, bound)
    b = jax.random.uniform(kb, (fan_out,), jnp.float32, -bound, bound)
    return w, b


if __name__ == "__main__":
    # Small shapes consistent with the module's config
    # (config.hidden_size=800, config.intermediate_size=128).
    B, S = 2, 8
    HIDDEN = 800
    INTERMEDIATE = 128

    root = jax.random.PRNGKey(0)
    kx, k1, k2 = jax.random.split(root, 3)

    x = jax.random.normal(kx, (B, S, HIDDEN), jnp.float32)
    w1, b1 = _init_linear(k1, HIDDEN, INTERMEDIATE)
    w2, b2 = _init_linear(k2, INTERMEDIATE, HIDDEN)

    # Reference in plain JAX (eval-mode dropout == identity).
    h_ref = x.reshape(B * S, HIDDEN) @ w1 + b1
    g_ref = 0.5 * h_ref * (1.0 + jax.lax.erf(h_ref * 0.7071067811865475))
    ref = (g_ref @ w2 + b2).reshape(B, S, HIDDEN)

    # f32 path, small row tile so the grid actually has >1 step (exercises the
    # tiled / pipelined code path even at these tiny shapes).
    out = feed_forward(x, w1, b1, w2, b2, tile_m=8)
    out = jax.block_until_ready(out)
    assert out.shape == (B, S, HIDDEN)
    assert jnp.allclose(out, ref, atol=1e-4, rtol=1e-4)

    # Default (single-tile) f32 path.
    out_full = feed_forward(x, w1, b1, w2, b2)
    out_full = jax.block_until_ready(out_full)
    assert jnp.allclose(out_full, ref, atol=1e-4, rtol=1e-4)

    # bf16 MXU-operand path (f32 accumulation) — the v6e/v7x fast path.
    out_bf16 = feed_forward(x, w1, b1, w2, b2, compute_dtype=jnp.bfloat16)
    out_bf16 = jax.block_until_ready(out_bf16)
    assert out_bf16.shape == (B, S, HIDDEN)
    assert bool(jnp.all(jnp.isfinite(out_bf16)))
    assert jnp.allclose(out_bf16, ref, atol=1e-1, rtol=1e-1)

    print("KERNEL_OK")
</pallas_src>

<mosaic_0001>
module attributes {stable_mosaic.version = 11 : i64} {
  func.func @_ffn_kernel(%arg0: i32, %arg1: memref<8x800xf32, #tpu.memory_space<vmem>>, %arg2: memref<800x128xf32, #tpu.memory_space<vmem>>, %arg3: memref<1x128xf32, #tpu.memory_space<vmem>>, %arg4: memref<128x800xf32, #tpu.memory_space<vmem>>, %arg5: memref<1x800xf32, #tpu.memory_space<vmem>>, %arg6: memref<8x800xf32, #tpu.memory_space<vmem>>) attributes {dimension_semantics = [#tpu.dimension_semantics<parallel>], iteration_bounds = array<i64: 2>, scalar_prefetch = 0 : i64, scratch_operands = 0 : i64, tpu.core_type = #tpu.core_type<tc>, window_params = [{transform_indices = @transform_0, window_bounds = array<i64: 8, 800>}, {pipeline_mode = #tpu.pipeline_mode<synchronous>, transform_indices = @transform_1, window_bounds = array<i64: 800, 128>}, {pipeline_mode = #tpu.pipeline_mode<synchronous>, transform_indices = @transform_2, window_bounds = array<i64: 1, 128>}, {pipeline_mode = #tpu.pipeline_mode<synchronous>, transform_indices = @transform_3, window_bounds = array<i64: 128, 800>}, {pipeline_mode = #tpu.pipeline_mode<synchronous>, transform_indices = @transform_4, window_bounds = array<i64: 1, 800>}, {transform_indices = @transform_5, window_bounds = array<i64: 8, 800>}]} {
    %c0 = arith.constant 0 : index
    %c0_0 = arith.constant 0 : index
    %0 = vector.load %arg1[%c0, %c0_0] : memref<8x800xf32, #tpu.memory_space<vmem>>, vector<8x800xf32>
    %c0_1 = arith.constant 0 : index
    %c0_2 = arith.constant 0 : index
    %1 = vector.load %arg2[%c0_1, %c0_2] : memref<800x128xf32, #tpu.memory_space<vmem>>, vector<800x128xf32>
    %cst = arith.constant dense<0.000000e+00> : vector<8x128xf32>
    %2 = tpu.matmul %0, %1, %cst {dimension_numbers = #tpu.dot_dimension_numbers<[1], [0], [0], [1], [0, 0, 1, 1], [], []>} : vector<8x800xf32>, vector<800x128xf32>, vector<8x128xf32> -> vector<8x128xf32>
    %c0_3 = arith.constant 0 : index
    %c0_4 = arith.constant 0 : index
    %3 = vector.load %arg3[%c0_3, %c0_4] : memref<1x128xf32, #tpu.memory_space<vmem>>, vector<1x128xf32>
    %4 = vector.broadcast %3 : vector<1x128xf32> to vector<8x128xf32>
    %5 = arith.addf %2, %4 : vector<8x128xf32>
    %cst_5 = arith.constant 5.000000e-01 : f32
    %6 = vector.broadcast %cst_5 : f32 to vector<8x128xf32>
    %7 = arith.mulf %6, %5 : vector<8x128xf32>
    %cst_6 = arith.constant 0.707106769 : f32
    %8 = vector.broadcast %cst_6 : f32 to vector<8x128xf32>
    %9 = arith.mulf %5, %8 : vector<8x128xf32>
    %10 = math.erf %9 : vector<8x128xf32>
    %cst_7 = arith.constant 1.000000e+00 : f32
    %11 = vector.broadcast %cst_7 : f32 to vector<8x128xf32>
    %12 = arith.addf %11, %10 : vector<8x128xf32>
    %13 = arith.mulf %7, %12 : vector<8x128xf32>
    %c0_8 = arith.constant 0 : index
    %c0_9 = arith.constant 0 : index
    %14 = vector.load %arg4[%c0_8, %c0_9] : memref<128x800xf32, #tpu.memory_space<vmem>>, vector<128x800xf32>
    %cst_10 = arith.constant dense<0.000000e+00> : vector<8x800xf32>
    %15 = tpu.matmul %13, %14, %cst_10 {dimension_numbers = #tpu.dot_dimension_numbers<[1], [0], [0], [1], [0, 0, 1, 1], [], []>} : vector<8x128xf32>, vector<128x800xf32>, vector<8x800xf32> -> vector<8x800xf32>
    %c0_11 = arith.constant 0 : index
    %c0_12 = arith.constant 0 : index
    %16 = vector.load %arg5[%c0_11, %c0_12] : memref<1x800xf32, #tpu.memory_space<vmem>>, vector<1x800xf32>
    %17 = vector.broadcast %16 : vector<1x800xf32> to vector<8x800xf32>
    %18 = arith.addf %15, %17 : vector<8x800xf32>
    %c0_13 = arith.constant 0 : index
    %c0_14 = arith.constant 0 : index
    %19 = vector.load %arg6[%c0_13, %c0_14] : memref<8x800xf32, #tpu.memory_space<vmem>>, vector<8x800xf32>
    tpu.vector_store %arg6[%c0_13, %c0_14], %18 {strides = array<i32>} : memref<8x800xf32, #tpu.memory_space<vmem>>, vector<8x800xf32>,
    return
  }
  func.func @transform_0(%arg0: i32) -> (i32, i32) {
    %c0_i32 = arith.constant 0 : i32
    %c0_i32_0 = arith.constant 0 : i32
    return %arg0, %c0_i32 : i32, i32
  }
  func.func @transform_1(%arg0: i32) -> (i32, i32) {
    %c0_i32 = arith.constant 0 : i32
    %c0_i32_0 = arith.constant 0 : i32
    %c0_i32_1 = arith.constant 0 : i32
    return %c0_i32, %c0_i32_0 : i32, i32
  }
  func.func @transform_2(%arg0: i32) -> (i32, i32) {
    %c0_i32 = arith.constant 0 : i32
    %c0_i32_0 = arith.constant 0 : i32
    %c0_i32_1 = arith.constant 0 : i32
    return %c0_i32, %c0_i32_0 : i32, i32
  }
  func.func @transform_3(%arg0: i32) -> (i32, i32) {
    %c0_i32 = arith.constant 0 : i32
    %c0_i32_0 = arith.constant 0 : i32
    %c0_i32_1 = arith.constant 0 : i32
    return %c0_i32, %c0_i32_0 : i32, i32
  }
  func.func @transform_4(%arg0: i32) -> (i32, i32) {
    %c0_i32 = arith.constant 0 : i32
    %c0_i32_0 = arith.constant 0 : i32
    %c0_i32_1 = arith.constant 0 : i32
    return %c0_i32, %c0_i32_0 : i32, i32
  }
  func.func @transform_5(%arg0: i32) -> (i32, i32) {
    %c0_i32 = arith.constant 0 : i32
    %c0_i32_0 = arith.constant 0 : i32
    return %arg0, %c0_i32 : i32, i32
  }
}

</mosaic_0001>

<bundles_post_ra>
// kernel: tpu_custom_call.1
= control target key start
LH: loop header
LB: loop body
LE: loop exit
PB: predicated region body
PF: predicated region fallthrough
CT: control target
= control target key end

     0   :  { %10 = vsyncpa [#allocation3], 0  ;;  %s2342_s0 = inlined_call_operand.hbm [shape: f32[16,800], index: 0, kind: input, shape index: {}]   ;;  %s2343_s1 = inlined_call_operand.hbm [shape: f32[800,128], index: 1, kind: input, shape index: {}]   ;;  %s2344_s2 = inlined_call_operand.hbm [shape: f32[1,128], index: 2, kind: input, shape index: {}]   ;;  %s2345_s3 = inlined_call_operand.hbm [shape: f32[128,800], index: 3, kind: input, shape index: {}]   ;;  %s2346_s4 = inlined_call_operand.hbm [shape: f32[1,800], index: 4, kind: input, shape index: {}]   ;;  %s2347_s5 = inlined_call_operand.hbm [shape: f32[16,800], index: 5, kind: output, shape index: {}]  }
   0x1   :  { %12 = vsyncpa [#allocation3 + $0x1], 0 }
   0x2   :  { %13 = vsyncpa [#allocation6], 0 }
   0x3   :  { %14 = vsyncpa [#allocation9], 0 }
   0x4   :  { %15 = vsyncpa [#allocation4], 0 }
   0x5   :  { %17 = vsyncpa [#allocation4 + $0x1], 0  ;;  %s2034_s18 = smov 0   ;;  %s2036_s19 = smov 0  }
   0x6   :  { %s2038_s20 = smov 0   ;;  %s2040_s21 = smov 0  }
   0x7 LB: > { %s1991_s22 = smov [#allocation5]   ;;  %s2055_s24 = sadd.s32 4294967295, %s1989_s21   ;;  %s1989_s21 = sphi %s2040_s21, %s2370_s21   ;;  %s1985_s20 = sphi %s2038_s20, %s2369_s20   ;;  %s1981_s19 = sphi %s2036_s19, %s2368_s19   ;;  %s1977_s18 = sphi %s2034_s18, %s2367_s18  }
   0x8   : > { %s176_s23 = sshll.u32 %s1991_s22, 4  ;;  %p1261_p0 = scmp.ge.s32.totalorder %s1989_s21, 1  ;;  %s2060_s23 = int_to_ptr.vmem [resolvable:$true] %s176_s23 }
   0x9   : > { %p2348_p1 = scmp.eq.s32.totalorder %s2055_s24, 0  ;;  %p164_p2 = scmp.lt.s32.totalorder %s1989_s21, 3 }
   0xa   : > { %s1992_s26 = smov [#allocation8]   ;;  %s1993_s29 = smov [#allocation7]  }
   0xb   : > { %p2062_p3 = pnand %p1261_p0, %p164_p2  ;;  %s200_s27 = sshll.u32 %s1992_s26, 4  ;;  %s2075_s27 = int_to_ptr.vmem [resolvable:$true] %s200_s27 }
   0xc   : > { %s2077_s30 = sshll.u32 %s1993_s29, 4  ;;  %s1773_s8 = scalar_lea.hbm %s2343_s1, 12800  ;;  %s191_s30 = int_to_ptr.vmem [resolvable:$true] %s2077_s30 }
   0xd   : > { %s2351_s25 = scalar_select %p2062_p3, 1, 0 }
   0xe   : > { %p1697_p5 = pneg %p2062_p3  ;;  %p1774_p7 = scmp.ne.s32.totalorder %s2343_s1, %s1773_s8 }
   0xf   : > { %p1780_p11 = scmp.lt.u32.totalorder %s1773_s8, %s2343_s1 }
  0x10   : > { %p2071_p6 = pnand %p1697_p5, %p2348_p1 }
  0x12   : > { %p2087_p8 = pneg %p2071_p6 }
  0x14   : > { %p1776_p9 = pnand %p2087_p8, %p1774_p7 }
  0x16   : > { %p1777_p10 = pneg %p1776_p9 }
  0x18   : > { %p1782_p12 = pnand %p1780_p11, %p1777_p10 }
  0x1a   : > { %1785 = shalt.err (!%p1782_p12)
}
  0x1b   : > { %s1786_s14 = scalar_lea.vmem %s2060_s23, 12800  ;;  %p1794_p5 = scmp.lt.s32.totalorder %s2060_s23, %s2060_s23 }
  0x1c   : > { %p1787_p13 = scmp.ne.s32.totalorder %s2060_s23, %s1786_s14  ;;  %p1795_p4 = scmp.lt.s32.totalorder %s1786_s14, %s1786_s14 }
  0x1e   : > { %p1789_p0 = pnand %p1787_p13, %p2087_p8  ;;  %p1796_p7 = por %p1795_p4, %p1794_p5 }
  0x20   : > { %p1790_p2 = pneg %p1789_p0 }
  0x22   : > { %p1797_p9 = pnand %p1796_p7, %p1790_p2 }
  0x24   : > { %1800 = shalt.err (!%p1797_p9)
}
  0x25   : > { %s1994_s15 = smov 128   ;;  %s1995_s16 = smov 8  }
  0x26   : > { %1700 = dma.hbm_to_vmem [thread:$0]  (!%p2071_p6), %s2343_s1, 12800, %s2060_s23, [#allocation6], %s1994_s15, %s1994_s15, %s1995_s16  }
  0x27   : > { %s1801_s6 = scalar_lea.hbm %s2345_s3, 14336 }
  0x28   : > { %p1802_p4 = scmp.ne.s32.totalorder %s2345_s3, %s1801_s6  ;;  %p1808_p12 = scmp.lt.u32.totalorder %s1801_s6, %s2345_s3 }
  0x2a   : > { %p1804_p10 = pnand %p1802_p4, %p2087_p8 }
  0x2c   : > { %p1805_p11 = pneg %p1804_p10 }
  0x2e   : > { %p1810_p13 = pnand %p1808_p12, %p1805_p11 }
  0x30   : > { %1813 = shalt.err (!%p1810_p13)
}
  0x31   : > { %s1814_s23 = scalar_lea.vmem %s2075_s27, 14336  ;;  %p1822_p7 = scmp.lt.s32.totalorder %s2075_s27, %s2075_s27 }
  0x32   : > { %p1815_p0 = scmp.ne.s32.totalorder %s2075_s27, %s1814_s23  ;;  %p1823_p9 = scmp.lt.s32.totalorder %s1814_s23, %s1814_s23 }
  0x34   : > { %p1817_p2 = pnand %p1815_p0, %p2087_p8  ;;  %p1824_p4 = por %p1823_p9, %p1822_p7 }
  0x36   : > { %p1818_p5 = pneg %p1817_p2 }
  0x38   : > { %p1825_p10 = pnand %p1824_p4, %p1818_p5 }
  0x3a   : > { %1828 = shalt.err (!%p1825_p10)
}
  0x3b   : > { %s1996_s12 = smov 896   ;;  %s1997_s13 = smov 56  }
  0x3c   : > { %1706 = dma.hbm_to_vmem [thread:$0]  (!%p2071_p6), %s2345_s3, 14336, %s2075_s27, [#allocation9], %s1996_s12, %s1996_s12, %s1997_s13  }
  0x3d   : > { %s1829_s22 = scalar_lea.hbm %s2344_s2, 16 }
  0x3e   : > { %p1830_p11 = scmp.ne.s32.totalorder %s2344_s2, %s1829_s22  ;;  %p1836_p0 = scmp.lt.u32.totalorder %s1829_s22, %s2344_s2 }
  0x40   : > { %p1832_p12 = pnand %p1830_p11, %p2087_p8 }
  0x42   : > { %p1833_p13 = pneg %p1832_p12 }
  0x44   : > { %p1838_p2 = pnand %p1836_p0, %p1833_p13 }
  0x46   : > { %1841 = shalt.err (!%p1838_p2)
}
  0x47   : > { %s1842_s8 = scalar_lea.vmem %s191_s30, 16  ;;  %s1849_s27 = scalar_lea.vmem %s191_s30, 32 }
  0x48   : > { %p1843_p5 = scmp.ne.s32.totalorder %s191_s30, %s1842_s8  ;;  %p1850_p4 = scmp.lt.s32.totalorder %s191_s30, %s191_s30 }
  0x49   : > { %p1851_p10 = scmp.lt.s32.totalorder %s1849_s27, %s1842_s8 }
  0x4a   : > { %p1845_p7 = pnand %p1843_p5, %p2087_p8 }
  0x4b   : > { %p1852_p1 = por %p1851_p10, %p1850_p4 }
  0x4c   : > { %p1846_p9 = pneg %p1845_p7 }
  0x4e   : > { %p1853_p3 = pnand %p1852_p1, %p1846_p9 }
  0x50   : > { %1856 = shalt.err (!%p1853_p3)
}
  0x51   : > { %1703 = dma.hbm_to_vmem [thread:$0]  (!%p2071_p6), %s2344_s2, 16, %s191_s30, [#allocation6]  }
  0x52   : > { %s1998_s23 = smov [#allocation10]   ;;  %s1857_s15 = scalar_lea.hbm %s2346_s4, 112 }
  0x53   : > { %s214_s12 = sshll.u32 %s1998_s23, 4  ;;  %p1858_p11 = scmp.ne.s32.totalorder %s2346_s4, %s1857_s15  ;;  %s215_s12 = int_to_ptr.vmem [resolvable:$true] %s214_s12 }
  0x54   : > { %p1864_p12 = scmp.lt.u32.totalorder %s1857_s15, %s2346_s4 }
  0x55   : > { %p1860_p1 = pnand %p1858_p11, %p2087_p8 }
  0x57   : > { %p1861_p3 = pneg %p1860_p1 }
  0x59   : > { %p1866_p13 = pnand %p1864_p12, %p1861_p3 }
  0x5b   : > { %1869 = shalt.err (!%p1866_p13)
}
  0x5c   : > { %s1870_s30 = scalar_lea.vmem %s215_s12, 112  ;;  %s1877_s29 = scalar_lea.vmem %s215_s12, 128 }
  0x5d   : > { %p1871_p0 = scmp.ne.s32.totalorder %s215_s12, %s1870_s30  ;;  %p1878_p7 = scmp.lt.s32.totalorder %s215_s12, %s215_s12 }
  0x5e   : > { %p1879_p9 = scmp.lt.s32.totalorder %s1877_s29, %s1870_s30 }
  0x5f   : > { %p1873_p2 = pnand %p1871_p0, %p2087_p8 }
  0x60   : > { %p1880_p4 = por %p1879_p9, %p1878_p7 }
  0x61   : > { %p1874_p5 = pneg %p1873_p2 }
  0x63   : > { %p1881_p10 = pnand %p1880_p4, %p1874_p5 }
  0x65   : > { %1884 = shalt.err (!%p1881_p10)
}
  0x66   : > { %1709 = dma.hbm_to_vmem [thread:$0]  (!%p2071_p6), %s2346_s4, 112, %s215_s12, [#allocation9]  }
  0x67   : > { %s1260_s11 = sadd.s32 4294967294, %s1989_s21   ;;  %s2170_s28 = sadd.s32 1, %s1989_s21  }
  0x68   : > { %s27_s8 = ssub.s32 %s1989_s21, %s2170_s28  ;;  %s30_s27 = sadd.s32 1, %s1985_s20 }
  0x69   : > { %p28_p8 = scmp.eq.s32.totalorder %s27_s8, 0  ;;  %p37_p11 = scmp.ne.s32.totalorder %s1985_s20, %s1981_s19 }
  0x6a   : > { %p38_p1 = scmp.eq.s32.totalorder %s1989_s21, 0  ;;  %p43_p3 = scmp.ne.s32.totalorder %s1981_s19, %s1977_s18 }
  0x6b   : > { %s2181_s9 = scalar_select %p28_p8, %s1985_s20, %s30_s27  }
  0x6c   : > { %p39_p12 = por %p38_p1, %p37_p11  ;;  %p2354_p13 = scmp.eq.s32.totalorder %s2055_s24, 0 }
  0x6d   : > { %p151_p6 = scmp.eq.s32.totalorder %s2055_s24, 1  ;;  %p157_p2 = scmp.eq.s32.totalorder %s1260_s11, 1 }
  0x6e   : > { %p2185_p0 = por %p2354_p13, %p43_p3  ;;  %p1722_p5 = scmp.lt.s32.totalorder %s1989_s21, 2 }
  0x6f   : > { %s225_s23 = sand.u32 1, %s1985_s20   ;;  %p2192_p7 = por %p151_p6, %p37_p11 }
  0x70   : > { %p2196_p9 = por %p157_p2, %p43_p3  ;;  %s1673_s14 = smul.u32 56, %s225_s23 }
  0x71   : > { %s2356_s12 = scalar_select %p2192_p7, 1, 0 }
  0x72   : > { %s2357_s13 = scalar_select %p2196_p9, 1, 0 }
  0x73   : > { %s1674_s15 = smul.u32 896, %s1989_s21  ;;  %p2201_p4 = pnand %p1722_p5, %p39_p12 }
  0x74   : > { %s229_s30 = scalar_lea.vmem [#allocation2], %s1673_s14  ;;  %s226_s6 = scalar_lea.sflag [#allocation3], %s225_s23 }
  0x75   : > { %s2208_s26 = scalar_lea.hbm %s2342_s0, %s1674_s15  ;;  %s237_s29 = sshll.u32 %s229_s30, 4  ;;  %s2210_s29 = int_to_ptr.vmem [resolvable:$true] %s237_s29 }
  0x76   : > { %s1885_s7 = scalar_lea.hbm %s2208_s26, 896  ;;  %p1887_p8 = pneg %p2201_p4 }
  0x77   : > { %p1886_p10 = scmp.ne.s32.totalorder %s2208_s26, %s1885_s7  ;;  %s1890_s27 = scalar_lea.hbm %s2342_s0, 1792 }
  0x78   : > { %p1891_p3 = scmp.lt.u32.totalorder %s2208_s26, %s2342_s0  ;;  %p1892_p12 = scmp.lt.u32.totalorder %s1890_s27, %s1885_s7 }
  0x79   : > { %p1888_p11 = pnand %p1887_p8, %p1886_p10  ;;  %p1894_p6 = scmp.lt.u32.totalorder %s1885_s7, %s2208_s26 }
  0x7a   : > { %p1893_p13 = por %p1892_p12, %p1891_p3 }
  0x7b   : > { %p1889_p1 = pneg %p1888_p11 }
  0x7c   : > { %p1895_p2 = por %p1894_p6, %p1893_p13 }
  0x7e   : > { %p1896_p5 = pnand %p1895_p2, %p1889_p1 }
  0x80   : > { %1899 = shalt.err (!%p1896_p5)
}
  0x81   : > { %s1900_s23 = scalar_lea.vmem %s2210_s29, 896  ;;  %s1999_s14 = smov [#allocation2]  }
  0x82   : > { %p1901_p10 = scmp.ne.s32.totalorder %s2210_s29, %s1900_s23  ;;  %s1905_s22 = sshll.u32 %s1999_s14, 4  ;;  %s1906_s22 = int_to_ptr.vmem [resolvable:$false] %s1905_s22 }
  0x83   : > { %s1907_s30 = scalar_lea.vmem %s1906_s22, 1792  ;;  %p1908_p7 = scmp.lt.s32.totalorder %s2210_s29, %s1906_s22 }
  0x84   : > { %p1903_p11 = pnand %p1901_p10, %p1887_p8  ;;  %p1909_p3 = scmp.lt.s32.totalorder %s1907_s30, %s1900_s23 }
  0x86   : > { %p1904_p9 = pneg %p1903_p11  ;;  %p1910_p12 = por %p1909_p3, %p1908_p7 }
  0x88   : > { %p1911_p13 = pnand %p1910_p12, %p1904_p9 }
  0x8a   : > { %1914 = shalt.err (!%p1911_p13)
}
  0x8b   : > { %1713 = dma.hbm_to_vmem [thread:$0]  (!%p2201_p4), %s2208_s26, 896, %s2210_s29, %s226_s6  }
  0x8c   : > { %p2359_p1 = scmp.ne.s32.totalorder %s2351_s25, 0 }
  0x8d   : > { %s2240_s7 = sand.u32 (!%p2359_p1), 1, %s1981_s19  }
  0x8e   : > { %246 = sbr.rel (%p2359_p1) target bundleno = 720 (0x2d0), region = 40  ;;  %s249_s8 = scalar_lea.sflag (!%p2359_p1), [#allocation3], %s2240_s7 }
  0x8f   : > { %s1675_s11 = smul.u32 (!%p2359_p1), 56, %s2240_s7 }
  0x91   : > { %s2246_s27 = scalar_lea.vmem (!%p2359_p1), [#allocation2], %s1675_s11 }
  0x95   : > { %1960 = dma.done.wait (%p2185_p0), %s249_s8, 896  }
  0x96   : > { %1962 = vsyncadd (%p2185_p0), %s249_s8, 4294966400  ;;  %p2360_p7 = scmp.eq.s32.totalorder %s2055_s24, 0 }
  0x98   : > { %1964 = dma.done.wait (%p2360_p7), [#allocation6], 12816   ;;  %p2361_p9 = pmov %p2360_p7 }
  0x99   : > { %p2362_p4 = pmov %p2360_p7 }
  0x9a   : > { %1966 = vsyncadd (%p2361_p9), [#allocation6], 4294954480 }
  0x9b   : > { %1968 = dma.done.wait (%p2362_p4), [#allocation9], 14448   ;;  %p2363_p8 = pmov %p2362_p4 }
  0x9c   : > { %v318_v0 = vld [vmem:[#allocation5 + $0x80] sm:$0xff]  ;;  %v319_v1 = vld [vmem:[#allocation5 + $0x88] sm:$0xff]  ;;  %v320_v11 = vld [vmem:[#allocation5 + $0x90] sm:$0xff]  ;;  %vm2001_vm0 = vmmov 0   ;;  %vm409_vm1 = vcmask 261120   ;;  %s294_s25 = scalar_lea.vmem [#allocation11], %s1675_s11 }
  0x9d   : > { %1970 = vsyncadd (%p2363_p8), [#allocation9], 4294952848  ;;  %v302_v2 = vld [vmem:[#allocation5] sm:$0xff]  ;;  %v1451_v3 = vpack.c.bf16 %v319_v1, %v318_v0  ;;  %v303_v4 = vld [vmem:[#allocation5 + $0x8] sm:$0xff]  ;;  %s1676_s10 = smul.u32 896, %s2055_s24  ;;  %s1152_s16 = sshll.u32 %s294_s25, 4  ;;  %s2299_s16 = int_to_ptr.vmem [resolvable:$true] %s1152_s16 }
  0x9e   : > { %v350_v5 = vld [vmem:[#allocation5 + $0x180] sm:$0xff]  ;;  %v351_v6 = vld [vmem:[#allocation5 + $0x188] sm:$0xff]  ;;  %v1453_v7 = vpack.c.bf16 %v303_v4, %v302_v2  ;;  %v321_v13 = vld [vmem:[#allocation5 + $0x98] sm:$0xff]  ;;  %s1138_s24 = scalar_lea.sflag [#allocation4], %s2240_s7  ;;  %s1915_s15 = scalar_lea.vmem %s2299_s16, 896 }
  0x9f   : > { %v1483_v8 = vpack.c.bf16 %v351_v6, %v350_v5  ;;  %v334_v9 = vld [vmem:[#allocation5 + $0x100] sm:$0xff]  ;;  %v335_v10 = vld [vmem:[#allocation5 + $0x108] sm:$0xff]  ;;  %1452 = vmatprep.subr.bf16.mxu0 %v1451_v3  ;;  %v304_v14 = vld [vmem:[#allocation5 + $0x10] sm:$0xff]  ;;  %v1455_v16 = vpack.c.bf16 %v321_v13, %v320_v11  ;;  %s2297_s6 = scalar_lea.hbm %s2347_s5, %s1676_s10  ;;  %p1916_p0 = scmp.ne.s32.totalorder %s2299_s16, %s1915_s15 }
  0xa0   : > { %v1485_v12 = vpack.c.bf16 %v335_v10, %v334_v9  ;;  %v305_v15 = vld [vmem:[#allocation5 + $0x18] sm:$0xff]  ;;  %1454 = vmatpush3.bf16.msra.mxu0 %v1453_v7  ;;  %v352_v18 = vld [vmem:[#allocation5 + $0x190] sm:$0xff]  ;;  %v322_v23 = vld [vmem:[#allocation5 + $0xa0] sm:$0xff]  ;;  %p2364_p6 = scmp.ne.s32.totalorder %s2356_s12, 0  ;;  %s2003_s17 = smov [#allocation11]  }
  0xa1   : > { %1484 = vmatprep.subr.bf16.mxu1 %v1483_v8  ;;  %v1457_v17 = vpack.c.bf16 %v305_v15, %v304_v14  ;;  %v353_v19 = vld [vmem:[#allocation5 + $0x198] sm:$0xff]  ;;  %v336_v20 = vld [vmem:[#allocation5 + $0x110] sm:$0xff]  ;;  %v323_v24 = vld [vmem:[#allocation5 + $0xa8] sm:$0xff]  ;;  %1456 = vmatprep.subr.bf16.mxu0 %v1455_v16  ;;  %s1919_s23 = sshll.u32 %s2003_s17, 4  ;;  %s1920_s23 = int_to_ptr.vmem [resolvable:$false] %s1919_s23 }
  0xa2   : > { %1486 = vmatpush3.bf16.msra.mxu1 %v1485_v12  ;;  %v1487_v21 = vpack.c.bf16 %v353_v19, %v352_v18  ;;  %v337_v22 = vld [vmem:[#allocation5 + $0x118] sm:$0xff]  ;;  %v1459_v26 = vpack.c.bf16 %v323_v24, %v322_v23  ;;  %v306_v27 = vld [vmem:[#allocation5 + $0x20] sm:$0xff]  ;;  %v307_v28 = vld [vmem:[#allocation5 + $0x28] sm:$0xff]  ;;  %p1917_p2 = pnand %p1916_p0, %p2364_p6  ;;  %s1921_s14 = scalar_lea.vmem %s1920_s23, 1792 }
  0xa3   : > { %v1489_v25 = vpack.c.bf16 %v337_v22, %v336_v20  ;;  %v354_v29 = vld [vmem:[#allocation5 + $0x1a0] sm:$0xff]  ;;  %v355_v30 = vld [vmem:[#allocation5 + $0x1a8] sm:$0xff]  ;;  %v1461_v33 = vpack.c.bf16 %v307_v28, %v306_v27  ;;  %v324_v35 = vld [vmem:[#allocation5 + $0xb0] sm:$0xff]  ;;  %p1922_p10 = scmp.lt.s32.totalorder %s2299_s16, %s1920_s23  ;;  %p1923_p11 = scmp.lt.s32.totalorder %s1921_s14, %s1915_s15 }
  0xa4   : > { %1488 = vmatprep.subr.bf16.mxu1 %v1487_v21  ;;  %v338_v31 = vld [vmem:[#allocation5 + $0x120] sm:$0xff]  ;;  %v339_v32 = vld [vmem:[#allocation5 + $0x128] sm:$0xff]  ;;  %1458 = vmatpush3.bf16.msra.mxu0 %v1457_v17  ;;  %v1491_v34 = vpack.c.bf16 %v355_v30, %v354_v29  ;;  %v325_v36 = vld [vmem:[#allocation5 + $0xb8] sm:$0xff]  ;;  %p1918_p5 = pneg %p1917_p2 }
  0xa5   : > { %v308_v37 = vld [vmem:[#allocation5 + $0x30] sm:$0xff]  ;;  %1460 = vmatprep.subr.bf16.mxu0 %v1459_v26  ;;  %v1493_v38 = vpack.c.bf16 %v339_v32, %v338_v31  ;;  %v1463_v39 = vpack.c.bf16 %v325_v36, %v324_v35  ;;  %v309_v40 = vld [vmem:[#allocation5 + $0x38] sm:$0xff]  ;;  %v326_v46 = vld [vmem:[#allocation5 + $0xc0] sm:$0xff]  ;;  %p1924_p3 = por %p1923_p11, %p1922_p10 }
  0xa6   : > { %1490 = vmatpush3.bf16.msra.mxu1 %v1489_v25  ;;  %v356_v41 = vld [vmem:[#allocation5 + $0x1b0] sm:$0xff]  ;;  %v357_v42 = vld [vmem:[#allocation5 + $0x1b8] sm:$0xff]  ;;  %v327_v47 = vld [vmem:[#allocation5 + $0xc8] sm:$0xff]  ;;  %v1465_v48 = vpack.c.bf16 %v309_v40, %v308_v37 }
  0xa7   : > { %1492 = vmatprep.subr.bf16.mxu1 %v1491_v34  ;;  %v1495_v43 = vpack.c.bf16 %v357_v42, %v356_v41  ;;  %v340_v44 = vld [vmem:[#allocation5 + $0x130] sm:$0xff]  ;;  %v341_v45 = vld [vmem:[#allocation5 + $0x138] sm:$0xff]  ;;  %v358_v49 = vld [vmem:[#allocation5 + $0x1c0] sm:$0xff]  ;;  %v1467_v52 = vpack.c.bf16 %v327_v47, %v326_v46  ;;  %p1925_p12 = pnand %p1924_p3, %p1918_p5 }
  0xa8   : > { %1462 = vmatpush3.bf16.msra.mxu0 %v1461_v33  ;;  %v359_v50 = vld [vmem:[#allocation5 + $0x1c8] sm:$0xff]  ;;  %v1497_v51 = vpack.c.bf16 %v341_v45, %v340_v44  ;;  %v310_v53 = vld [vmem:[#allocation5 + $0x40] sm:$0xff]  ;;  %v328_v58 = vld [vmem:[#allocation5 + $0xd0] sm:$0xff] }
  0xa9   : > { %1464 = vmatprep.subr.bf16.mxu0 %v1463_v39  ;;  %v311_v54 = vld [vmem:[#allocation5 + $0x48] sm:$0xff]  ;;  %v342_v55 = vld [vmem:[#allocation5 + $0x140] sm:$0xff]  ;;  %v1499_v56 = vpack.c.bf16 %v359_v50, %v358_v49  ;;  %v329_v59 = vld [vmem:[#allocation5 + $0xd8] sm:$0xff] }
  0xaa   : > { %1494 = vmatpush3.bf16.msra.mxu1 %v1493_v38  ;;  %v343_v57 = vld [vmem:[#allocation5 + $0x148] sm:$0xff]  ;;  %v360_v60 = vld [vmem:[#allocation5 + $0x1d0] sm:$0xff]  ;;  %v361_v61 = vld [vmem:[#allocation5 + $0x1d8] sm:$0xff]  ;;  %v1469_v62 = vpack.c.bf16 %v311_v54, %v310_v53  ;;  %v1471_v0 = vpack.c.bf16 %v329_v59, %v328_v58 }
  0xab   : > { %1496 = vmatprep.subr.bf16.mxu1 %v1495_v43  ;;  %v1501_v63 = vpack.c.bf16 %v343_v57, %v342_v55  ;;  %v312_v1 = vld [vmem:[#allocation5 + $0x50] sm:$0xff]  ;;  %v313_v2 = vld [vmem:[#allocation5 + $0x58] sm:$0xff]  ;;  %v1503_v4 = vpack.c.bf16 %v361_v61, %v360_v60  ;;  %v330_v6 = vld [vmem:[#allocation5 + $0xe0] sm:$0xff] }
  0xac   : > { %1466 = vmatpush3.bf16.msra.mxu0 %v1465_v48  ;;  %v344_v3 = vld [vmem:[#allocation5 + $0x150] sm:$0xff]  ;;  %v345_v5 = vld [vmem:[#allocation5 + $0x158] sm:$0xff]  ;;  %v331_v7 = vld [vmem:[#allocation5 + $0xe8] sm:$0xff]  ;;  %v1473_v10 = vpack.c.bf16 %v313_v2, %v312_v1 }
  0xad   : > { %1468 = vmatprep.subr.bf16.mxu0 %v1467_v52  ;;  %v362_v8 = vld [vmem:[#allocation5 + $0x1e0] sm:$0xff]  ;;  %v363_v9 = vld [vmem:[#allocation5 + $0x1e8] sm:$0xff]  ;;  %v296_v12 = vld [vmem:[%s2246_s27 + $0x8] sm:$0xff]  ;;  %v1505_v13 = vpack.c.bf16 %v345_v5, %v344_v3  ;;  %v1475_v14 = vpack.c.bf16 %v331_v7, %v330_v6 }
  0xae   : > { %1498 = vmatpush3.bf16.msra.mxu1 %v1497_v51  ;;  %v314_v11 = vld [vmem:[#allocation5 + $0x60] sm:$0xff]  ;;  %v315_v15 = vld [vmem:[#allocation5 + $0x68] sm:$0xff]  ;;  %v1507_v18 = vpack.c.bf16 %v363_v9, %v362_v8  ;;  %v332_v19 = vld [vmem:[#allocation5 + $0xf0] sm:$0xff]  ;;  %477 = vmatprep.mubr.f32.mxu0 %v296_v12  ;;  %v2000_v51 = vmov 0.0|0.0  }
  0xaf   : > { %1500 = vmatprep.subr.bf16.mxu1 %v1499_v56  ;;  %v346_v16 = vld [vmem:[#allocation5 + $0x160] sm:$0xff]  ;;  %v347_v17 = vld [vmem:[#allocation5 + $0x168] sm:$0xff]  ;;  %v333_v20 = vld [vmem:[#allocation5 + $0xf8] sm:$0xff]  ;;  %v1477_v24 = vpack.c.bf16 %v315_v15, %v314_v11 }
  0xb0   : > { %1470 = vmatpush3.bf16.msra.mxu0 %v1469_v62  ;;  %v298_v21 = vld [vmem:[%s2246_s27 + $0x18] sm:$0xff]  ;;  %v364_v22 = vld [vmem:[#allocation5 + $0x1f0] sm:$0xff]  ;;  %v365_v23 = vld [vmem:[#allocation5 + $0x1f8] sm:$0xff]  ;;  %v1509_v25 = vpack.c.bf16 %v347_v17, %v346_v16  ;;  %v1479_v26 = vpack.c.bf16 %v333_v20, %v332_v19 }
  0xb1   : > { %1472 = vmatprep.subr.bf16.mxu0 %v1471_v0  ;;  %547 = vmatprep.mubr.f32.mxu1 %v298_v21  ;;  %v316_v27 = vld [vmem:[#allocation5 + $0x70] sm:$0xff]  ;;  %v317_v28 = vld [vmem:[#allocation5 + $0x78] sm:$0xff]  ;;  %v1511_v30 = vpack.c.bf16 %v365_v23, %v364_v22  ;;  %v382_v32 = vld [vmem:[#allocation5 + $0x280] sm:$0xff] }
  0xb2   : > { %1502 = vmatpush3.bf16.msra.mxu1 %v1501_v63  ;;  %v348_v29 = vld [vmem:[#allocation5 + $0x170] sm:$0xff]  ;;  %v349_v31 = vld [vmem:[#allocation5 + $0x178] sm:$0xff]  ;;  %v383_v33 = vld [vmem:[#allocation5 + $0x288] sm:$0xff]  ;;  %v1481_v34 = vpack.c.bf16 %v317_v28, %v316_v27  ;;  %v2002_v63 = vmov 0.0  }
  0xb3   : > { %1504 = vmatprep.subr.bf16.mxu1 %v1503_v4  ;;  %v1513_v35 = vpack.c.bf16 %v349_v31, %v348_v29  ;;  %v1515_v36 = vpack.c.bf16 %v383_v33, %v382_v32  ;;  %v366_v37 = vld [vmem:[#allocation5 + $0x200] sm:$0xff]  ;;  %v367_v38 = vld [vmem:[#allocation5 + $0x208] sm:$0xff]  ;;  %v384_v39 = vld [vmem:[#allocation5 + $0x290] sm:$0xff] }
  0xb4   : > { %1474 = vmatpush3.bf16.msra.mxu0 %v1473_v10  ;;  %v385_v40 = vld [vmem:[#allocation5 + $0x298] sm:$0xff]  ;;  %v295_v41 = vld [vmem:[%s2246_s27] sm:$0xff]  ;;  %v1517_v42 = vpack.c.bf16 %v367_v38, %v366_v37  ;;  %v398_v47 = vld [vmem:[#allocation5 + $0x300] sm:$0xff] }
  0xb5   : > { %1476 = vmatprep.subr.bf16.mxu0 %v1475_v14  ;;  %v297_v43 = vld [vmem:[%s2246_s27 + $0x10] sm:$0xff]  ;;  %v368_v44 = vld [vmem:[#allocation5 + $0x210] sm:$0xff]  ;;  %v1519_v45 = vpack.c.bf16 %v385_v40, %v384_v39  ;;  %v399_v48 = vld [vmem:[#allocation5 + $0x308] sm:$0xff] }
  0xb6   : > { %1506 = vmatpush3.bf16.msra.mxu1 %v1505_v13  ;;  %v369_v46 = vld [vmem:[#allocation5 + $0x218] sm:$0xff]  ;;  %v386_v49 = vld [vmem:[#allocation5 + $0x2a0] sm:$0xff]  ;;  %v387_v50 = vld [vmem:[#allocation5 + $0x2a8] sm:$0xff]  ;;  %v1548_v52 = vpack.c.bf16 %v399_v48, %v398_v47 }
  0xb7   : > { %1508 = vmatprep.subr.bf16.mxu1 %v1507_v18  ;;  %v400_v53 = vld [vmem:[#allocation5 + $0x310] sm:$0xff]  ;;  %v401_v55 = vld [vmem:[#allocation5 + $0x318] sm:$0xff]  ;;  %v1521_v56 = vpack.c.bf16 %v369_v46, %v368_v44  ;;  %v1523_v57 = vpack.c.bf16 %v387_v50, %v386_v49  ;;  %v370_v58 = vld [vmem:[#allocation5 + $0x220] sm:$0xff] }
  0xb8   : > { %1478 = vmatpush3.bf16.msra.mxu0 %v1477_v24  ;;  %v300_v54 = vld [vmem:[%s2246_s27 + $0x28] sm:$0xff]  ;;  %v371_v59 = vld [vmem:[#allocation5 + $0x228] sm:$0xff]  ;;  %v1551_v60 = vpack.c.bf16 %v401_v55, %v400_v53  ;;  %v301_v4 = vld [vmem:[%s2246_s27 + $0x30] sm:$0xff] }
  0xb9   : > { %1480 = vmatprep.subr.bf16.mxu0 %v1479_v26  ;;  %v388_v61 = vld [vmem:[#allocation5 + $0x2b0] sm:$0xff]  ;;  %v389_v62 = vld [vmem:[#allocation5 + $0x2b8] sm:$0xff]  ;;  %v1525_v0 = vpack.c.bf16 %v371_v59, %v370_v58  ;;  %v390_v5 = vld [vmem:[#allocation5 + $0x2c0] sm:$0xff] }
  0xba   : > { %1510 = vmatpush3.bf16.msra.mxu1 %v1509_v25  ;;  %v1527_v1 = vpack.c.bf16 %v389_v62, %v388_v61  ;;  %v372_v2 = vld [vmem:[#allocation5 + $0x230] sm:$0xff]  ;;  %v373_v3 = vld [vmem:[#allocation5 + $0x238] sm:$0xff]  ;;  %v391_v6 = vld [vmem:[#allocation5 + $0x2c8] sm:$0xff] }
  0xbb   : > { %1512 = vmatprep.subr.bf16.mxu1 %v1511_v30  ;;  %v1529_v7 = vpack.c.bf16 %v373_v3, %v372_v2  ;;  %v1531_v8 = vpack.c.bf16 %v391_v6, %v390_v5  ;;  %v374_v9 = vld [vmem:[#allocation5 + $0x240] sm:$0xff]  ;;  %v375_v10 = vld [vmem:[#allocation5 + $0x248] sm:$0xff]  ;;  %v392_v11 = vld [vmem:[#allocation5 + $0x2d0] sm:$0xff] }
  0xbc   : > { %1482 = vmatpush3.bf16.msra.mxu0 %v1481_v34  ;;  %v393_v12 = vld [vmem:[#allocation5 + $0x2d8] sm:$0xff]  ;;  %v1533_v13 = vpack.c.bf16 %v375_v10, %v374_v9  ;;  %v376_v15 = vld [vmem:[#allocation5 + $0x250] sm:$0xff]  ;;  %v394_v17 = vld [vmem:[#allocation5 + $0x2e0] sm:$0xff] }
  0xbd   : > { %1516 = vmatprep.subr.bf16.mxu0 %v1515_v36  ;;  %v1535_v14 = vpack.c.bf16 %v393_v12, %v392_v11  ;;  %v377_v16 = vld [vmem:[#allocation5 + $0x258] sm:$0xff]  ;;  %v395_v18 = vld [vmem:[#allocation5 + $0x2e8] sm:$0xff]  ;;  %v378_v21 = vld [vmem:[#allocation5 + $0x260] sm:$0xff] }
  0xbe   : > { %1514 = vmatpush3.bf16.msra.mxu1 %v1513_v35  ;;  %v1537_v19 = vpack.c.bf16 %v377_v16, %v376_v15  ;;  %v1539_v20 = vpack.c.bf16 %v395_v18, %v394_v17  ;;  %v379_v22 = vld [vmem:[#allocation5 + $0x268] sm:$0xff]  ;;  %v396_v23 = vld [vmem:[#allocation5 + $0x2f0] sm:$0xff]  ;;  %v397_v24 = vld [vmem:[#allocation5 + $0x2f8] sm:$0xff] }
  0xbf   : > { %1547 = vmatprep.subr.bf16.mxu1 %v2000_v51  ;;  %478 = vmatmul.mubr.f32.vlgmr.msra.gmra.mrb[0].mxu0 %v295_v41  ;;  %v1541_v25 = vpack.c.bf16 %v379_v22, %v378_v21  ;;  %v1543_v26 = vpack.c.bf16 %v397_v24, %v396_v23  ;;  %v380_v27 = vld [vmem:[#allocation5 + $0x270] sm:$0xff]  ;;  %v381_v28 = vld [vmem:[#allocation5 + $0x278] sm:$0xff]  ;;  %v706_v32 = vld [vmem:[#allocation8 + $0x40] sm:$0xff] }
  0xc0   : > { %1518 = vmatpush3.bf16.msra.mxu0 %v1517_v42  ;;  %617 = vmatprep.mubr.f32.mxu0 %v300_v54  ;;  %v1545_v29 = vpack.c.bf16 %v381_v28, %v380_v27  ;;  %v299_v30 = vld [vmem:[%s2246_s27 + $0x20] sm:$0xff]  ;;  %v701_v33 = vld [vmem:[#allocation8 + $0x18] sm:$0xff] }
  0xc1   : > { %548 = vmatmul.mubr.f32.vlgmr.msra.gmra.mrb[0].mxu1 %v297_v43  ;;  %1520 = vmatprep.subr.bf16.mxu0 %v1519_v45  ;;  %v699_v31 = vld [vmem:[#allocation8 + $0x8] sm:$0xff]  ;;  %v708_v35 = vld [vmem:[#allocation8 + $0x50] sm:$0xff]  ;;  %v698_v36 = vld [vmem:[#allocation8] sm:$0xff] }
  0xc2   : > { %1549 = vmatpush3.bf16.msra.mxu1 %v1548_v52  ;;  %1413 = vmatprep.mubr.msk.f32.mxu1 %vm2001_vm0, %v2002_v63  ;;  %v1553_v34 = vpack.c.bf16 %v706_v32, %v699_v31  ;;  %v705_v37 = vld [vmem:[#allocation8 + $0x38] sm:$0xff]  ;;  %v1585_v38 = vpack.c.bf16 %v708_v35, %v701_v33  ;;  %v700_v40 = vld [vmem:[#allocation8 + $0x10] sm:$0xff]  ;;  %v707_v41 = vld [vmem:[#allocation8 + $0x48] sm:$0xff] }
  0xc3   : > { %1550 = vmatprep.subr.bf16.mxu1 %v2000_v51  ;;  %v1555_v39 = vpack.c.bf16 %v705_v37, %v698_v36  ;;  %v713_v42 = vld [vmem:[#allocation8 + $0x78] sm:$0xff]  ;;  %v1587_v43 = vpack.c.bf16 %v707_v41, %v700_v40  ;;  %v720_v44 = vld [vmem:[#allocation8 + $0xb0] sm:$0xff]  ;;  %v715_v45 = vld [vmem:[#allocation8 + $0x88] sm:$0xff] }
  0xc4   : > { %1522 = vmatpush3.bf16.msra.mxu0 %v1521_v56  ;;  %v722_v46 = vld [vmem:[#allocation8 + $0xc0] sm:$0xff]  ;;  %v1557_v47 = vpack.c.bf16 %v720_v44, %v713_v42  ;;  %v712_v49 = vld [vmem:[#allocation8 + $0x70] sm:$0xff]  ;;  %v719_v50 = vld [vmem:[#allocation8 + $0xa8] sm:$0xff] }
  0xc5   : > { %1524 = vmatprep.subr.bf16.mxu0 %v1523_v57  ;;  %v1589_v48 = vpack.c.bf16 %v722_v46, %v715_v45  ;;  %v714_v52 = vld [vmem:[#allocation8 + $0x80] sm:$0xff]  ;;  %v1559_v53 = vpack.c.bf16 %v719_v50, %v712_v49  ;;  %v721_v54 = vld [vmem:[#allocation8 + $0xb8] sm:$0xff]  ;;  %v727_v56 = vld [vmem:[#allocation8 + $0xe8] sm:$0xff] }
  0xc6   : > { %1552 = vmatpush3.bf16.msra.mxu1 %v1551_v60  ;;  %v1591_v55 = vpack.c.bf16 %v721_v54, %v714_v52  ;;  %v734_v57 = vld [vmem:[#allocation8 + $0x120] sm:$0xff]  ;;  %v729_v58 = vld [vmem:[#allocation8 + $0xf8] sm:$0xff]  ;;  %v736_v60 = vld [vmem:[#allocation8 + $0x130] sm:$0xff] }
  0xc7   : > { %1554 = vmatprep.subr.bf16.mxu1 %v1553_v34  ;;  %v1561_v59 = vpack.c.bf16 %v734_v57, %v727_v56  ;;  %v726_v61 = vld [vmem:[#allocation8 + $0xe0] sm:$0xff]  ;;  %v733_v62 = vld [vmem:[#allocation8 + $0x118] sm:$0xff]  ;;  %v728_v2 = vld [vmem:[#allocation8 + $0xf0] sm:$0xff] }
  0xc8   : > { %1526 = vmatpush3.bf16.msra.mxu0 %v1525_v0  ;;  %v1593_v0 = vpack.c.bf16 %v736_v60, %v729_v58  ;;  %v735_v3 = vld [vmem:[#allocation8 + $0x128] sm:$0xff]  ;;  %v741_v5 = vld [vmem:[#allocation8 + $0x158] sm:$0xff]  ;;  %v748_v6 = vld [vmem:[#allocation8 + $0x190] sm:$0xff] }
  0xc9   : > { %1414 = vmatmul.mubr.msk.f32.vlgmr.msra.gmra.mrb[2].mxu1 %vm409_vm1, %v301_v4  ;;  %1528 = vmatprep.subr.bf16.mxu0 %v1527_v1  ;;  %v1563_v1 = vpack.c.bf16 %v733_v62, %v726_v61  ;;  %v1595_v4 = vpack.c.bf16 %v735_v3, %v728_v2  ;;  %v750_v9 = vld [vmem:[#allocation8 + $0x1a0] sm:$0xff]  ;;  %v740_v10 = vld [vmem:[#allocation8 + $0x150] sm:$0xff]  ;;  %v747_v11 = vld [vmem:[#allocation8 + $0x188] sm:$0xff] }
  0xca   : > { %911 = vmatprep.mubr.f32.mxu1 %v2002_v63  ;;  %1556 = vmatpush1.bf16.msra.mxu1 %v1555_v39  ;;  %v749_v15 = vld [vmem:[#allocation8 + $0x198] sm:$0xff]  ;;  %v755_v17 = vld [vmem:[#allocation8 + $0x1c8] sm:$0xff]  ;;  %v762_v18 = vld [vmem:[#allocation8 + $0x200] sm:$0xff] }
  0xcb   : > { %1558 = vmatprep.subr.bf16.mxu1 %v1557_v47  ;;  %v764_v21 = vld [vmem:[#allocation8 + $0x210] sm:$0xff]  ;;  %v754_v22 = vld [vmem:[#allocation8 + $0x1c0] sm:$0xff]  ;;  %v761_v23 = vld [vmem:[#allocation8 + $0x1f8] sm:$0xff] }
  0xcc   : > { %1530 = vmatpush3.bf16.msra.mxu0 %v1529_v7  ;;  %v743_v7 = vld [vmem:[#allocation8 + $0x168] sm:$0xff]  ;;  %v778_v33 = vld [vmem:[#allocation8 + $0x280] sm:$0xff]  ;;  %v768_v34 = vld [vmem:[#allocation8 + $0x230] sm:$0xff] }
  0xcd   : > { %1532 = vmatprep.subr.bf16.mxu0 %v1531_v8  ;;  %v1565_v8 = vpack.c.bf16 %v748_v6, %v741_v5  ;;  %v1597_v12 = vpack.c.bf16 %v750_v9, %v743_v7  ;;  %v763_v27 = vld [vmem:[#allocation8 + $0x208] sm:$0xff]  ;;  %v777_v39 = vld [vmem:[#allocation8 + $0x278] sm:$0xff]  ;;  %v790_v42 = vld [vmem:[#allocation8 + $0x2e0] sm:$0xff] }
  0xce   : > { %1560 = vmatpush1.bf16.msra.mxu1 %v1559_v53  ;;  %v771_v31 = vld [vmem:[#allocation8 + $0x248] sm:$0xff]  ;;  %v792_v45 = vld [vmem:[#allocation8 + $0x2f0] sm:$0xff]  ;;  %v782_v46 = vld [vmem:[#allocation8 + $0x2a0] sm:$0xff] }
  0xcf   : > { %1562 = vmatprep.subr.bf16.mxu1 %v1561_v59  ;;  %v775_v35 = vld [vmem:[#allocation8 + $0x268] sm:$0xff]  ;;  %v1605_v36 = vpack.c.bf16 %v778_v33, %v771_v31  ;;  %v789_v47 = vld [vmem:[#allocation8 + $0x2d8] sm:$0xff]  ;;  %v784_v50 = vld [vmem:[#allocation8 + $0x2b0] sm:$0xff] }
  0xd0   : > { %1534 = vmatpush3.bf16.msra.mxu0 %v1533_v13  ;;  %v1567_v13 = vpack.c.bf16 %v747_v11, %v740_v10  ;;  %v1575_v37 = vpack.c.bf16 %v775_v35, %v768_v34  ;;  %v783_v41 = vld [vmem:[#allocation8 + $0x2a8] sm:$0xff]  ;;  %v1579_v49 = vpack.c.bf16 %v789_v47, %v782_v46  ;;  %v797_v54 = vld [vmem:[#allocation8 + $0x318] sm:$0xff]  ;;  %v806_v58 = vld [vmem:[#allocation8 + $0x360] sm:$0xff] }
  0xd1   : > { %1536 = vmatprep.subr.bf16.mxu0 %v1535_v14  ;;  %v742_v14 = vld [vmem:[#allocation8 + $0x160] sm:$0xff]  ;;  %v1577_v44 = vpack.c.bf16 %v790_v42, %v783_v41  ;;  %v791_v52 = vld [vmem:[#allocation8 + $0x2e8] sm:$0xff]  ;;  %v796_v59 = vld [vmem:[#allocation8 + $0x310] sm:$0xff] }
  0xd2   : > { %1564 = vmatpush1.bf16.msra.mxu1 %v1563_v1  ;;  %v1599_v16 = vpack.c.bf16 %v749_v15, %v742_v14  ;;  %v1611_v53 = vpack.c.bf16 %v791_v52, %v784_v50  ;;  %v799_v56 = vld [vmem:[#allocation8 + $0x328] sm:$0xff]  ;;  %v805_v1 = vld [vmem:[#allocation8 + $0x358] sm:$0xff]  ;;  %v716_v34 = vld [vmem:[#allocation8 + $0x90] sm:$0xff] }
  0xd3   : > { %1566 = vmatprep.subr.bf16.mxu1 %v1565_v8  ;;  %v803_v60 = vld [vmem:[#allocation8 + $0x348] sm:$0xff]  ;;  %v1613_v61 = vpack.c.bf16 %v806_v58, %v799_v56  ;;  %v1273_v7 = vld [vmem:[#allocation7] ss:$0 sm:$0xff]  ;;  %v738_v41 = vld [vmem:[#allocation8 + $0x140] sm:$0xff] }
  0xd4   : > { %1538 = vmatpush3.bf16.msra.mxu0 %v1537_v19  ;;  %v757_v19 = vld [vmem:[#allocation8 + $0x1d8] sm:$0xff]  ;;  %v1583_v62 = vpack.c.bf16 %v803_v60, %v796_v59  ;;  %v703_v3 = vld [vmem:[#allocation8 + $0x28] sm:$0xff]  ;;  %v732_v47 = vld [vmem:[#allocation8 + $0x110] sm:$0xff] }
  0xd5   : > { %1540 = vmatprep.subr.bf16.mxu0 %v1539_v20  ;;  %v1569_v20 = vpack.c.bf16 %v762_v18, %v755_v17  ;;  %v1601_v24 = vpack.c.bf16 %v764_v21, %v757_v19  ;;  %v737_v46 = vld [vmem:[#allocation8 + $0x138] sm:$0xff]  ;;  %v752_v50 = vld [vmem:[#allocation8 + $0x1b0] sm:$0xff]  ;;  %v751_v56 = vld [vmem:[#allocation8 + $0x1a8] sm:$0xff] }
  0xd6   : > { %1568 = vmatpush1.bf16.msra.mxu1 %v1567_v13  ;;  %v753_v58 = vld [vmem:[#allocation8 + $0x1b8] sm:$0xff]  ;;  %v759_v59 = vld [vmem:[#allocation8 + $0x1e8] sm:$0xff]  ;;  %v766_v60 = vld [vmem:[#allocation8 + $0x220] sm:$0xff] }
  0xd7   : > { %1570 = vmatprep.subr.bf16.mxu1 %v1569_v20 }
  0xd8   : > { %1542 = vmatpush3.bf16.msra.mxu0 %v1541_v25  ;;  %v1571_v25 = vpack.c.bf16 %v761_v23, %v754_v22  ;;  %v702_v23 = vld [vmem:[#allocation8 + $0x20] sm:$0xff] }
  0xd9   : > { %1544 = vmatprep.subr.bf16.mxu0 %v1543_v26  ;;  %v756_v26 = vld [vmem:[#allocation8 + $0x1d0] sm:$0xff] }
  0xda   : > { %v1603_v28 = vpack.c.bf16 %v763_v27, %v756_v26  ;;  %1572 = vmatpush1.bf16.msra.mxu1 %v1571_v25  ;;  %v704_v25 = vld [vmem:[#allocation8 + $0x30] sm:$0xff]  ;;  %v711_v26 = vld [vmem:[#allocation8 + $0x68] sm:$0xff] }
  0xdb   : > { %v1650_v33 = vpack.c.bf16 %v711_v26, %v704_v25  ;;  %v800_v26 = vld [vmem:[#allocation8 + $0x330] sm:$0xff] }
  0xdc   : > { %1546 = vmatpush3.bf16.msra.mxu0 %v1545_v29  ;;  %v769_v29 = vld [vmem:[#allocation8 + $0x238] sm:$0xff] }
  0xdd   : > { %1586 = vmatprep.subr.bf16.mxu0 %v1585_v38  ;;  %v770_v38 = vld [vmem:[#allocation8 + $0x240] sm:$0xff] }
  0xde   : > { %v1607_v40 = vpack.c.bf16 %v777_v39, %v770_v38  ;;  %v718_v38 = vld [vmem:[#allocation8 + $0xa0] sm:$0xff]  ;;  %v725_v39 = vld [vmem:[#allocation8 + $0xd8] sm:$0xff] }
  0xdf   : > { %618 = vmatmul.mubr.f32.vlgmr.msra.gmra.mrb[2].mxu0 %v299_v30  ;;  %v776_v30 = vld [vmem:[#allocation8 + $0x270] sm:$0xff] }
  0xe0   : > { %982 = vmatprep.mubr.f32.mxu0 %v2002_v63  ;;  %1588 = vmatpush1.bf16.msra.mxu0 %v1587_v43  ;;  %v1573_v32 = vpack.c.bf16 %v776_v30, %v769_v29  ;;  %v785_v43 = vld [vmem:[#allocation8 + $0x2b8] sm:$0xff]  ;;  %v724_v29 = vld [vmem:[#allocation8 + $0xd0] sm:$0xff] }
  0xe1   : > { %1590 = vmatprep.subr.bf16.mxu0 %v1589_v48  ;;  %v1609_v48 = vpack.c.bf16 %v792_v45, %v785_v43  ;;  %v1653_v43 = vpack.c.bf16 %v725_v39, %v718_v38  ;;  %v810_v38 = vld [vmem:[#allocation10] sm:$0x7f] }
  0xe2   : > { %1574 = vmatprep.subr.bf16.mxu1 %v1573_v32 }
  0xe3   : > { %1576 = vmatpush1.bf16.msra.mxu1 %v1575_v37  ;;  %v723_v37 = vld [vmem:[#allocation8 + $0xc8] sm:$0xff] }
  0xe4   : > { %1592 = vmatpush1.bf16.msra.mxu0 %v1591_v55  ;;  %1578 = vmatprep.subr.bf16.mxu1 %v1577_v44  ;;  %v804_v55 = vld [vmem:[#allocation8 + $0x350] sm:$0xff]  ;;  %v1623_v42 = vpack.c.bf16 %v723_v37, %v716_v34  ;;  %v730_v44 = vld [vmem:[#allocation8 + $0x100] sm:$0xff] }
  0xe5   : > { %1594 = vmatprep.subr.bf16.mxu0 %v1593_v0  ;;  %v1581_v57 = vpack.c.bf16 %v804_v55, %v797_v54  ;;  %v798_v0 = vld [vmem:[#allocation8 + $0x320] sm:$0xff]  ;;  %v1627_v52 = vpack.c.bf16 %v737_v46, %v730_v44  ;;  %v744_v54 = vld [vmem:[#allocation8 + $0x170] sm:$0xff] }
  0xe6   : > { %v1615_v2 = vpack.c.bf16 %v805_v1, %v798_v0  ;;  %v758_v0 = vld [vmem:[#allocation8 + $0x1e0] sm:$0xff]  ;;  %v765_v1 = vld [vmem:[#allocation8 + $0x218] sm:$0xff] }
  0xe7   : > { %1580 = vmatpush1.bf16.msra.mxu1 %v1579_v49  ;;  %v745_v49 = vld [vmem:[#allocation8 + $0x178] sm:$0xff] }
  0xe8   : > { %1596 = vmatpush1.bf16.msra.mxu0 %v1595_v4  ;;  %1582 = vmatprep.subr.bf16.mxu1 %v1581_v57  ;;  %v710_v4 = vld [vmem:[#allocation8 + $0x60] sm:$0xff]  ;;  %v1629_v55 = vpack.c.bf16 %v752_v50, %v745_v49 }
  0xe9   : > { %1598 = vmatprep.subr.bf16.mxu0 %v1597_v12  ;;  %v1617_v5 = vpack.c.bf16 %v710_v4, %v703_v3  ;;  %v746_v57 = vld [vmem:[#allocation8 + $0x180] sm:$0xff]  ;;  %v767_v3 = vld [vmem:[#allocation8 + $0x228] sm:$0xff]  ;;  %v773_v4 = vld [vmem:[#allocation8 + $0x258] sm:$0xff] }
  0xeb   : > { %1584 = vmatpush1.bf16.msra.mxu1 %v1583_v62  ;;  %v1659_v62 = vpack.c.bf16 %v753_v58, %v746_v57 }
  0xec   : > { %1600 = vmatpush1.bf16.msra.mxu0 %v1599_v16  ;;  %1618 = vmatprep.subr.bf16.mxu1 %v1617_v5  ;;  %v780_v5 = vld [vmem:[#allocation8 + $0x290] sm:$0xff] }
  0xed   : > { %1602 = vmatprep.subr.bf16.mxu0 %v1601_v24  ;;  %v709_v24 = vld [vmem:[#allocation8 + $0x58] sm:$0xff] }
  0xee   : > { %v1619_v32 = vpack.c.bf16 %v709_v24, %v702_v23  ;;  %v808_v23 = vld [vmem:[#allocation8 + $0x370] sm:$0xff] }
  0xf0   : > { %1604 = vmatpush1.bf16.msra.mxu0 %v1603_v28  ;;  %v717_v28 = vld [vmem:[#allocation8 + $0x98] sm:$0xff] }
  0xf1   : > { %1606 = vmatprep.subr.bf16.mxu0 %v1605_v36  ;;  %v1621_v36 = vpack.c.bf16 %v724_v29, %v717_v28  ;;  %v807_v28 = vld [vmem:[#allocation8 + $0x368] sm:$0xff]  ;;  %v802_v29 = vld [vmem:[#allocation8 + $0x340] sm:$0xff] }
  0xf4   : > { %1608 = vmatpush1.bf16.msra.mxu0 %v1607_v40  ;;  %v731_v40 = vld [vmem:[#allocation8 + $0x108] sm:$0xff] }
  0xf5   : > { %1610 = vmatprep.subr.bf16.mxu0 %v1609_v48  ;;  %v1625_v45 = vpack.c.bf16 %v738_v41, %v731_v40  ;;  %v739_v48 = vld [vmem:[#allocation8 + $0x148] sm:$0xff] }
  0xf8   : > { %1612 = vmatpush1.bf16.msra.mxu0 %v1611_v53  ;;  %v1656_v53 = vpack.c.bf16 %v739_v48, %v732_v47 }
  0xf9   : > { %1614 = vmatprep.subr.bf16.mxu0 %v1613_v61  ;;  %v1631_v61 = vpack.c.bf16 %v751_v56, %v744_v54 }
  0xfc   : > { %1616 = vmatpush1.bf16.msra.mxu0 %v1615_v2  ;;  %v760_v2 = vld [vmem:[#allocation8 + $0x1f0] sm:$0xff] }
  0xfd   : > { %1649 = vmatprep.subr.bf16.mxu0 %v2000_v51 }
 0x192   : > { %v1310_v6 = vpop.f32.mrb[0].mxu0 }
 0x193   : > { %v1311_v8 = vpop.f32.mrb[1].mxu0 }
 0x194   : > { %v1345_v9 = vpop.f32.mrb[0].mxu1  ;;  %v1312_v10 = vadd.f32 %v1311_v8, %v1310_v6  ;;  %v1635_v6 = vpack.c.bf16 %v765_v1, %v758_v0  ;;  %v772_v8 = vld [vmem:[#allocation8 + $0x250] sm:$0xff] }
 0x195   : > { %v1346_v11 = vpop.f32.mrb[1].mxu1 }
 0x196   : > { %v1347_v12 = vadd.f32 %v1346_v11, %v1345_v9  ;;  %v480_v13 = vadd.f32 %v1312_v10, %v1273_v7  ;;  %v1662_v7 = vpack.c.bf16 %v767_v3, %v760_v2  ;;  %v1637_v9 = vpack.c.bf16 %v780_v5, %v773_v4  ;;  %v779_v10 = vld [vmem:[#allocation8 + $0x288] sm:$0xff]  ;;  %v774_v11 = vld [vmem:[#allocation8 + $0x260] sm:$0xff] }
 0x198   : > { %v550_v14 = vadd.f32 %v1347_v12, %v480_v13  ;;  %v781_v12 = vld [vmem:[#allocation8 + $0x298] sm:$0xff]  ;;  %v787_v13 = vld [vmem:[#allocation8 + $0x2c8] sm:$0xff] }
 0x19c   : > { %v689_v15 = vpop.f32.mrb[2].mxu1 }
 0x19d   : > { %v1415_v16 = vpop.f32.mrb[3].mxu1 }
 0x19e   : > { %v1665_v16 = vpack.c.bf16 %v781_v12, %v774_v11 }
 0x1b2   : > { %v1380_v17 = vpop.f32.mrb[2].mxu0 }
 0x1b3   : > { %v1381_v18 = vpop.f32.mrb[3].mxu0 }
 0x1b4   : > { %v1382_v19 = vadd.f32 %v1381_v18, %v1380_v17  ;;  %v786_v17 = vld [vmem:[#allocation8 + $0x2c0] sm:$0xff] }
 0x1b6   : > { %v620_v20 = vadd.f32 %v1382_v19, %v550_v14  ;;  %v794_v14 = vld [vmem:[#allocation8 + $0x300] sm:$0xff]  ;;  %v793_v19 = vld [vmem:[#allocation8 + $0x2f8] sm:$0xff] }
 0x1b7   : > { %v1641_v18 = vpack.c.bf16 %v794_v14, %v787_v13  ;;  %v1643_v24 = vpack.c.bf16 %v793_v19, %v786_v17 }
 0x1b8   : > { %v690_v21 = vadd.f32 %v689_v15, %v620_v20  ;;  %v1639_v15 = vpack.c.bf16 %v779_v10, %v772_v8  ;;  %v788_v20 = vld [vmem:[#allocation8 + $0x2d0] sm:$0xff] }
 0x1ba   : > { %v694_v22 = vmul.f32 0.70710677, %v690_v21  ;;  %v693_v30 = vmul.f32 0.5, %v690_v21  ;;  %v795_v21 = vld [vmem:[#allocation8 + $0x308] sm:$0xff] }
 0x1bb   : > { %v1668_v25 = vpack.c.bf16 %v795_v21, %v788_v20 }
 0x1bc   : > { %1771 = verf.f32 %v694_v22  ;;  %v801_v22 = vld [vmem:[#allocation8 + $0x338] sm:$0xff] }
 0x1c6   : > { %v1772_v27 = vpop.eup %1771 }
 0x1c7   : > { %v696_v31 = vadd.f32 1.0, %v1772_v27  ;;  %v1645_v27 = vpack.c.bf16 %v808_v23, %v801_v22 }
 0x1c9   : > { %v2275_v35 = vmul.f32 %v696_v31, %v693_v30  ;;  %v809_v30 = vld [vmem:[#allocation8 + $0x378] sm:$0xff]  ;;  %v1647_v31 = vpack.c.bf16 %v807_v28, %v800_v26 }
 0x1cb   : > { %912 = vmatmul.mubr.f32.vlgmr.msra.gmra.mrb[4].mxu1 %v2275_v35  ;;  %983 = vmatmul.mubr.f32.vlgmr.msra.gmra.mrb[4].mxu0 %v2275_v35 }
 0x1cc   : > { %1620 = vmatpush1.bf16.msra.mxu1 %v1619_v32  ;;  %1651 = vmatpush3.bf16.msra.mxu0 %v1650_v33  ;;  %v1671_v32 = vpack.c.bf16 %v809_v30, %v802_v29  ;;  %v812_v33 = vlaneseq }
 0x1cd   : > { %1622 = vmatprep.subr.bf16.mxu1 %v1621_v36  ;;  %1652 = vmatprep.subr.bf16.mxu0 %v2000_v51 }
 0x1ce   : > { %1053 = vmatprep.mubr.f32.mxu1 %v2002_v63  ;;  %1448 = vmatprep.mubr.msk.f32.mxu0 %vm2001_vm0, %v2002_v63  ;;  %v1633_v63 = vpack.c.bf16 %v766_v60, %v759_v59  ;;  %v813_v34 = vshrl.u32 %v812_v33, 7 }
 0x1d0   : > { %1624 = vmatpush1.bf16.msra.mxu1 %v1623_v42  ;;  %1654 = vmatpush3.bf16.msra.mxu0 %v1653_v43  ;;  %v814_v36 = vsub.s32 0, %v813_v34  ;;  %v822_v37 = vsub.s32 2, %v813_v34  ;;  %v818_v39 = vsub.s32 1, %v813_v34  ;;  %v826_v40 = vsub.s32 3, %v813_v34 }
 0x1d1   : > { %1626 = vmatprep.subr.bf16.mxu1 %v1625_v45  ;;  %1655 = vmatprep.subr.bf16.mxu0 %v2000_v51  ;;  %v834_v54 = vsub.s32 5, %v813_v34 }
 0x1d2   : > { %v815_v41 = vrot.slane %v810_v38, %v814_v36  ;;  %v823_v42 = vrot.slane %v810_v38, %v822_v37  ;;  %v819_v43 = vrot.slane %v810_v38, %v818_v39  ;;  %v827_v44 = vrot.slane %v810_v38, %v826_v40 }
 0x1d3   : > { %v835_v57 = vrot.slane %v810_v38, %v834_v54 }
 0x1d4   : > { %1628 = vmatpush1.bf16.msra.mxu1 %v1627_v52  ;;  %1657 = vmatpush3.bf16.msra.mxu0 %v1656_v53  ;;  %v830_v52 = vsub.s32 4, %v813_v34  ;;  %v838_v53 = vsub.s32 6, %v813_v34 }
 0x1d5   : > { %1630 = vmatprep.subr.bf16.mxu1 %v1629_v55  ;;  %1658 = vmatprep.subr.bf16.mxu0 %v2000_v51 }
 0x1d6   : > { %v831_v55 = vrot.slane %v810_v38, %v830_v52  ;;  %v839_v56 = vrot.slane %v810_v38, %v838_v53 }
 0x1d8   : > { %1632 = vmatpush1.bf16.msra.mxu1 %v1631_v61  ;;  %1660 = vmatpush3.bf16.msra.mxu0 %v1659_v62 }
 0x1d9   : > { %1634 = vmatprep.subr.bf16.mxu1 %v1633_v63  ;;  %1661 = vmatprep.subr.bf16.mxu0 %v2000_v51 }
 0x1dc   : > { %1636 = vmatpush1.bf16.msra.mxu1 %v1635_v6  ;;  %1663 = vmatpush3.bf16.msra.mxu0 %v1662_v7 }
 0x1dd   : > { %1638 = vmatprep.subr.bf16.mxu1 %v1637_v9  ;;  %1664 = vmatprep.subr.bf16.mxu0 %v2000_v51 }
 0x1e0   : > { %1640 = vmatpush1.bf16.msra.mxu1 %v1639_v15  ;;  %1666 = vmatpush3.bf16.msra.mxu0 %v1665_v16 }
 0x1e1   : > { %1642 = vmatprep.subr.bf16.mxu1 %v1641_v18  ;;  %1667 = vmatprep.subr.bf16.mxu0 %v2000_v51 }
 0x1e4   : > { %1644 = vmatpush1.bf16.msra.mxu1 %v1643_v24  ;;  %1669 = vmatpush3.bf16.msra.mxu0 %v1668_v25 }
 0x1e5   : > { %1646 = vmatprep.subr.bf16.mxu1 %v1645_v27  ;;  %1670 = vmatprep.subr.bf16.mxu0 %v2000_v51 }
 0x1e8   : > { %1648 = vmatpush1.bf16.msra.mxu1 %v1647_v31  ;;  %1672 = vmatpush3.bf16.msra.mxu0 %v1671_v32 }
 0x1eb   : > { %1054 = vmatmul.mubr.f32.vlgmr.msra.gmra.mrb[6].mxu1 %v2275_v35  ;;  %1449 = vmatmul.mubr.f32.vlgmr.msra.gmra.mrb[6].mxu0 %v2275_v35 }
 0x29e   : > { %v913_v45 = vpop.f32.mrb[4].mxu1  ;;  %v984_v51 = vpop.f32.mrb[4].mxu0 }
 0x29f   : > { %v914_v46 = vadd.f32 %v913_v45, %v815_v41  ;;  %v985_v47 = vadd.f32 %v984_v51, %v823_v42  ;;  %v915_v48 = vpop.f32.mrb[5].mxu1  ;;  %v986_v49 = vpop.f32.mrb[5].mxu0 }
 0x2a0   : > { %v916_v35 = vadd.f32 %v915_v48, %v819_v43  ;;  %v987_v50 = vadd.f32 %v986_v49, %v827_v44 }
 0x2a1   : > { %1130 = vst [vmem:[%s294_s25] sm:$0xff] %v914_v46  ;;  %1132 = vst [vmem:[%s294_s25 + $0x10] sm:$0xff] %v985_v47 }
 0x2a2   : > { %1131 = vst [vmem:[%s294_s25 + $0x8] sm:$0xff] %v916_v35  ;;  %1133 = vst [vmem:[%s294_s25 + $0x18] sm:$0xff] %v987_v50 }
 0x2be   : > { %v1055_v58 = vpop.f32.mrb[6].mxu1  ;;  %v1126_v59 = vpop.f32.mrb[6].mxu0 }
 0x2bf   : > { %v1056_v60 = vadd.f32 %v1055_v58, %v831_v55  ;;  %v1127_v61 = vadd.f32 %v1126_v59, %v839_v56  ;;  %v1057_v62 = vpop.f32.mrb[7].mxu1  ;;  %v1450_v0 = vpop.f32.mrb[7].mxu0 }
 0x2c0   : > { %v1058_v63 = vadd.f32 %v1057_v62, %v835_v57 }
 0x2c1   : > { %1134 = vst [vmem:[%s294_s25 + $0x20] sm:$0xff] %v1056_v60  ;;  %1136 = vst.msk [vmem:[%s294_s25 + $0x30] sm:$0xff] %vm409_vm1, %v1127_v61 }
 0x2c2   : > { %1135 = vst [vmem:[%s294_s25 + $0x28] sm:$0xff] %v1058_v63 }
 0x2c3   : > { %1928 = shalt.err (!%p1925_p12)
}
 0x2c4   : > { %s1929_s22 = scalar_lea.hbm %s2297_s6, 896  ;;  %s1933_s11 = scalar_lea.hbm %s2347_s5, 1792 }
 0x2c5   : > { %p1930_p13 = scmp.ne.s32.totalorder %s2297_s6, %s1929_s22  ;;  %p1934_p9 = scmp.lt.u32.totalorder %s2297_s6, %s2347_s5 }
 0x2c6   : > { %p1935_p4 = scmp.lt.u32.totalorder %s1933_s11, %s1929_s22  ;;  %p1937_p0 = scmp.lt.u32.totalorder %s1929_s22, %s2297_s6 }
 0x2c7   : > { %p1931_p1 = pnand %p1930_p13, %p2364_p6 }
 0x2c8   : > { %p1936_p8 = por %p1935_p4, %p1934_p9 }
 0x2c9   : > { %p1932_p7 = pneg %p1931_p1 }
 0x2ca   : > { %p1938_p2 = por %p1937_p0, %p1936_p8 }
 0x2cc   : > { %p1939_p5 = pnand %p1938_p2, %p1932_p7 }
 0x2ce   : > { %1942 = shalt.err (!%p1939_p5)
}
 0x2cf   : > { %1695 = dma.vmem_to_hbm [thread:$0]  (%p2364_p6), %s2299_s16, 896, %s2297_s6, %s1138_s24  }
 0x2d0 PF: > { %s1164_s25 = sand.u32 1, %s1977_s18   ;;  %p2365_p10 = scmp.ne.s32.totalorder %s2357_s13, 0 }
 0x2d1   : > { %p2366_p11 = scmp.ge.s32.totalorder %s1989_s21, 2  ;;  %s1165_s10 = scalar_lea.sflag [#allocation4], %s1164_s25 }
 0x2d3   : > { %p1715_p3 = pnand %p2366_p11, %p2365_p10 }
 0x2d5   : > { %1972 = dma.done.wait (!%p1715_p3), %s1165_s10, 896  }
 0x2d6   : > { %1974 = vsyncadd (!%p1715_p3), %s1165_s10, 4294966400  ;;  %p20_p12 = scmp.ge.s32.totalorder %s2170_s28, 4   ;;  %s2367_s18 = smov %s1981_s19 }
 0x2d7   : > { %s2368_s19 = smov %s1985_s20  ;;  %s2369_s20 = smov %s2181_s9 }
 0x2d8   : > { %s2370_s21 = smov %s2170_s28  ;;  %22 = sbr.rel (!%p20_p12) target bundleno = 7 (0x7), region = 101 }
 0x2df   :  { %1170 = vsyncpa [#allocation3], 1 }
 0x2e0   :  { %1172 = vsyncpa [#allocation3 + $0x1], 1 }
 0x2e1   :  { %1173 = vsyncpa [#allocation6], 1 }
 0x2e2   :  { %1174 = vsyncpa [#allocation9], 1 }
 0x2e3   :  { %1175 = vsyncpa [#allocation4], 1 }
 0x2e4   :  { %1177 = vsyncpa [#allocation4 + $0x1], 1 }

</bundles_post_ra>
